<compile_context>
chip_gen: v7x
topology: tpu7x:2x2x1
jax: 0.10.0
libtpu: 0.0.40
codegen_flags: <defaults>
</compile_context>

<pallas_src>
import jax
import jax.numpy as jnp
from jax.experimental import pallas as pl
from jax.experimental.pallas import tpu as pltpu

# Layer widths of the decoder: 2 -> 4 -> 8 -> 16 -> 32 -> 64 -> 128 -> 256 -> 784
DIMS = [2, 4, 8, 16, 32, 64, 128, 256, 784]
OUT_DIM = DIMS[-1]          # 784 (stored directly; last 16-lane group is a masked vst)


def decoder_kernel(x_ref, w1_ref, w_small_ref, w7_ref, w8_ref, b_ref, o_ref):
    """One batch tile through all 8 layers. h is a (tile_b, 128) f32 tile for layers 1-6."""
    x = x_ref[...]                                   # (tile_b, 2) f32
    w1 = w1_ref[...]                                 # (2, 128) f32, cols >= 4 are zero

    # Layer 1 (2 -> 4) on the VPU: two broadcast FMAs. Result lands directly in a
    # zero-padded (tile_b, 128) tile (zero W cols, zero bias, ReLU(0) = 0).
    h = x[:, 0:1] * w1[0:1, :] + x[:, 1:2] * w1[1:2, :] + b_ref[0:1, :128]
    h = jnp.maximum(h, 0.0)

    # Layers 2-6: identical zero-padded bf16 128x128 MXU matmuls, f32 accumulate,
    # f32 bias + ReLU (padded columns stay zero).
    for i in range(5):
        y = jnp.dot(h.astype(jnp.bfloat16), w_small_ref[i],
                    preferred_element_type=jnp.float32)
        h = jnp.maximum(y + b_ref[i + 1:i + 2, :128], 0.0)

    # Layer 7: 128 -> 256.
    y = jnp.dot(h.astype(jnp.bfloat16), w7_ref[...],
                preferred_element_type=jnp.float32)
    h = jnp.maximum(y + b_ref[6:7, :256], 0.0)

    # Layer 8: 256 -> 784, stored at the true output width (no padded columns).
    y = jnp.dot(h.astype(jnp.bfloat16), w8_ref[...],
                preferred_element_type=jnp.float32)
    o_ref[...] = jnp.maximum(y + b_ref[7:8, :], 0.0)


def _choose_tiling(B):
    """Pick (tile_b, b_pad): sublane-aligned batch tile and padded batch rows.

    Goals (perf review): minimal row over-padding, big tiles at large B, and
    >= 2 grid steps whenever possible so both v7x TensorCores get work."""
    b8 = max(8, -(-B // 8) * 8)                  # rows rounded up to a sublane multiple
    if b8 <= 16:
        return b8, b8                            # tiny batch: single step
    if b8 <= 2048:
        half = -(-b8 // 16) * 8                  # two equal sublane-aligned tiles
        return half, 2 * half                    # (zero / near-zero over-padding)
    for tile_b in (1024, 512, 256):              # large batch: biggest tile with
        b_pad = -(-b8 // tile_b) * tile_b        # over-padding <= 12.5%
        if (b_pad - b8) * 8 <= b8:
            return tile_b, b_pad
    return 256, -(-b8 // 256) * 256


def decoder_forward(x, kparams):
    """x: (B, 2) float32. kparams: (w1, w_small, w7, w8, b_all) packed kernel params."""
    w1, w_small, w7, w8, b_all = kparams
    B, fin = x.shape
    tile_b, b_pad = _choose_tiling(B)

    if b_pad != B:                               # tiny row-only pad (8 B / row)
        x_in = jnp.zeros((b_pad, fin), jnp.float32).at[:B].set(x)
    else:
        x_in = x

    weight_bytes = (w1.size * 4 + w_small.size * 2 + w7.size * 2
                    + w8.size * 2 + b_all.size * 4)
    flops = 2 * b_pad * (5 * 128 * 128 + 128 * 256 + 256 * OUT_DIM) \
        + 2 * b_pad * 2 * 128
    bytes_accessed = b_pad * (fin * 4 + OUT_DIM * 4) + weight_bytes

    out = pl.pallas_call(
        decoder_kernel,
        out_shape=jax.ShapeDtypeStruct((b_pad, OUT_DIM), jnp.float32),
        grid=(b_pad // tile_b,),
        in_specs=[
            pl.BlockSpec((tile_b, fin), lambda i: (i, 0)),       # x: tiled over batch, no lane pad
            pl.BlockSpec((2, 128), lambda i: (0, 0)),            # W1 rows, resident
            pl.BlockSpec((5, 128, 128), lambda i: (0, 0, 0)),    # packed W2..W6 (bf16), resident
            pl.BlockSpec((128, 256), lambda i: (0, 0)),          # W7 (bf16), resident
            pl.BlockSpec((256, OUT_DIM), lambda i: (0, 0)),      # W8 (bf16), resident
            pl.BlockSpec((8, OUT_DIM), lambda i: (0, 0)),        # all biases (f32), resident
        ],
        out_specs=pl.BlockSpec((tile_b, OUT_DIM), lambda i: (i, 0)),
        compiler_params=pltpu.CompilerParams(dimension_semantics=("parallel",)),
        cost_estimate=pl.CostEstimate(flops=int(flops), transcendentals=0,
                                      bytes_accessed=int(bytes_accessed)),
    )(x_in, w1, w_small, w7, w8, b_all)

    return out if b_pad == B else out[:B]


def init_params(key):
    """Deterministic init mimicking PyTorch nn.Linear default (uniform +/- 1/sqrt(fan_in)).

    Returns logical per-layer params: W stored transposed as (in, out), b as (out,)."""
    params = []
    for i in range(len(DIMS) - 1):
        fan_in, fan_out = DIMS[i], DIMS[i + 1]
        key, kw, kb = jax.random.split(key, 3)
        bound = 1.0 / jnp.sqrt(jnp.float32(fan_in))
        w = jax.random.uniform(kw, (fan_in, fan_out), jnp.float32, -bound, bound)
        b = jax.random.uniform(kb, (fan_out,), jnp.float32, -bound, bound)
        params.append((w, b))
    return params


def pack_params(params):
    """Pack logical params into the zero-padded, lane-aligned kernel buffers."""
    # Layer 1 weight as two 128-wide rows (f32, VPU path), cols >= 4 zero.
    w1 = jnp.zeros((2, 128), jnp.float32).at[:, :DIMS[1]].set(params[0][0])

    # Layers 2-6 packed into one (5, 128, 128) bf16 tensor, zero-padded.
    w_small = jnp.zeros((5, 128, 128), jnp.float32)
    for i in range(5):
        w = params[i + 1][0]
        w_small = w_small.at[i, : w.shape[0], : w.shape[1]].set(w)
    w_small = w_small.astype(jnp.bfloat16)

    w7 = params[6][0].astype(jnp.bfloat16)       # (128, 256)
    w8 = params[7][0].astype(jnp.bfloat16)       # (256, 784) - no column padding

    # All biases in one (8, 784) f32 slab, zero-padded per row.
    b_all = jnp.zeros((8, OUT_DIM), jnp.float32)
    for i in range(8):
        b = params[i][1]
        b_all = b_all.at[i, : b.shape[0]].set(b)
    return w1, w_small, w7, w8, b_all


def decoder_ref(x, params):
    """Pure-JAX reference replicating the kernel numerics (layer 1 f32 on VPU,
    layers 2-8 bf16 MXU operands with f32 accumulation)."""
    w1, b1 = params[0]
    h = jnp.maximum(jnp.dot(x, w1) + b1, 0.0)
    for w, b in params[1:]:
        y = jnp.dot(h.astype(jnp.bfloat16), w.astype(jnp.bfloat16),
                    preferred_element_type=jnp.float32)
        h = jnp.maximum(y + b, 0.0)
    return h
    # TODO(synk): versus the true float32 PyTorch decoder, the bf16 MXU operands
    # introduce ~1e-2 relative error compounded over 8 layers; switch the packed
    # weights back to float32 if that tolerance is unacceptable.


if __name__ == "__main__":
    key = jax.random.PRNGKey(0)
    key, kx = jax.random.split(key)

    params = init_params(key)
    kparams = pack_params(params)

    # Small batch (single grid step, tile_b = 8).
    B = 8
    x = jax.random.normal(kx, (B, 2), jnp.float32)
    out = jax.block_until_ready(decoder_forward(x, kparams))
    ref = decoder_ref(x, params)
    assert out.shape == (B, 784), out.shape
    assert jnp.allclose(out, ref, atol=1e-3, rtol=1e-3), "mismatch vs reference (B=8)"

    # Non-multiple batch: exercises the 2-step grid (2 x 152 rows) + row pad/slice path.
    B2 = 300
    x2 = jax.random.normal(jax.random.PRNGKey(1), (B2, 2), jnp.float32)
    out2 = jax.block_until_ready(decoder_forward(x2, kparams))
    ref2 = decoder_ref(x2, params)
    assert out2.shape == (B2, 784), out2.shape
    assert jnp.allclose(out2, ref2, atol=1e-3, rtol=1e-3), "mismatch vs reference (B=300)"

    print("KERNEL_OK")
</pallas_src>

<mosaic_0001>
module attributes {stable_mosaic.version = 11 : i64} {
  func.func @decoder_kernel(%arg0: i32, %arg1: memref<8x2xf32, #tpu.memory_space<vmem>>, %arg2: memref<2x128xf32, #tpu.memory_space<vmem>>, %arg3: memref<5x128x128xbf16, #tpu.memory_space<vmem>>, %arg4: memref<128x256xbf16, #tpu.memory_space<vmem>>, %arg5: memref<256x784xbf16, #tpu.memory_space<vmem>>, %arg6: memref<8x784xf32, #tpu.memory_space<vmem>>, %arg7: memref<8x784xf32, #tpu.memory_space<vmem>>) attributes {dimension_semantics = [#tpu.dimension_semantics<parallel>], iteration_bounds = array<i64: 1>, scalar_prefetch = 0 : i64, scratch_operands = 0 : i64, tpu.core_type = #tpu.core_type<tc>, window_params = [{transform_indices = @transform_0, window_bounds = array<i64: 8, 2>}, {pipeline_mode = #tpu.pipeline_mode<synchronous>, transform_indices = @transform_1, window_bounds = array<i64: 2, 128>}, {pipeline_mode = #tpu.pipeline_mode<synchronous>, transform_indices = @transform_2, window_bounds = array<i64: 5, 128, 128>}, {pipeline_mode = #tpu.pipeline_mode<synchronous>, transform_indices = @transform_3, window_bounds = array<i64: 128, 256>}, {pipeline_mode = #tpu.pipeline_mode<synchronous>, transform_indices = @transform_4, window_bounds = array<i64: 256, 784>}, {pipeline_mode = #tpu.pipeline_mode<synchronous>, transform_indices = @transform_5, window_bounds = array<i64: 8, 784>}, {transform_indices = @transform_6, window_bounds = array<i64: 8, 784>}]} {
    %c0 = arith.constant 0 : index
    %c0_0 = arith.constant 0 : index
    %0 = vector.load %arg1[%c0, %c0_0] : memref<8x2xf32, #tpu.memory_space<vmem>>, vector<8x2xf32>
    %c0_1 = arith.constant 0 : index
    %c0_2 = arith.constant 0 : index
    %1 = vector.load %arg2[%c0_1, %c0_2] : memref<2x128xf32, #tpu.memory_space<vmem>>, vector<2x128xf32>
    %2 = vector.extract_strided_slice %0 {offsets = [0, 0], sizes = [8, 1], strides = [1, 1]} : vector<8x2xf32> to vector<8x1xf32>
    %3 = vector.extract_strided_slice %1 {offsets = [0, 0], sizes = [1, 128], strides = [1, 1]} : vector<2x128xf32> to vector<1x128xf32>
    %4 = vector.broadcast %2 : vector<8x1xf32> to vector<8x128xf32>
    %5 = vector.broadcast %3 : vector<1x128xf32> to vector<8x128xf32>
    %6 = arith.mulf %4, %5 : vector<8x128xf32>
    %7 = vector.extract_strided_slice %0 {offsets = [0, 1], sizes = [8, 1], strides = [1, 1]} : vector<8x2xf32> to vector<8x1xf32>
    %8 = vector.extract_strided_slice %1 {offsets = [1, 0], sizes = [1, 128], strides = [1, 1]} : vector<2x128xf32> to vector<1x128xf32>
    %9 = vector.broadcast %7 : vector<8x1xf32> to vector<8x128xf32>
    %10 = vector.broadcast %8 : vector<1x128xf32> to vector<8x128xf32>
    %11 = arith.mulf %9, %10 : vector<8x128xf32>
    %12 = arith.addf %6, %11 : vector<8x128xf32>
    %c0_3 = arith.constant 0 : index
    %c0_4 = arith.constant 0 : index
    %13 = vector.load %arg6[%c0_3, %c0_4] : memref<8x784xf32, #tpu.memory_space<vmem>>, vector<1x128xf32>
    %14 = vector.broadcast %13 : vector<1x128xf32> to vector<8x128xf32>
    %15 = arith.addf %12, %14 : vector<8x128xf32>
    %cst = arith.constant 0.000000e+00 : f32
    %16 = vector.broadcast %cst : f32 to vector<8x128xf32>
    %17 = arith.maximumf %15, %16 : vector<8x128xf32>
    %18 = arith.truncf %17 : vector<8x128xf32> to vector<8x128xbf16>
    %c0_5 = arith.constant 0 : index
    %c0_6 = arith.constant 0 : index
    %c0_7 = arith.constant 0 : index
    %19 = vector.load %arg3[%c0_5, %c0_6, %c0_7] : memref<5x128x128xbf16, #tpu.memory_space<vmem>>, vector<1x128x128xbf16>
    %20 = vector.shape_cast %19 : vector<1x128x128xbf16> to vector<128x128xbf16>
    %cst_8 = arith.constant dense<0.000000e+00> : vector<8x128xf32>
    %21 = tpu.matmul %18, %20, %cst_8 {dimension_numbers = #tpu.dot_dimension_numbers<[1], [0], [0], [1], [0, 0, 1, 1], [], []>} : vector<8x128xbf16>, vector<128x128xbf16>, vector<8x128xf32> -> vector<8x128xf32>
    %c1 = arith.constant 1 : index
    %c0_9 = arith.constant 0 : index
    %22 = vector.load %arg6[%c1, %c0_9] : memref<8x784xf32, #tpu.memory_space<vmem>>, vector<1x128xf32>
    %23 = vector.broadcast %22 : vector<1x128xf32> to vector<8x128xf32>
    %24 = arith.addf %21, %23 : vector<8x128xf32>
    %cst_10 = arith.constant 0.000000e+00 : f32
    %25 = vector.broadcast %cst_10 : f32 to vector<8x128xf32>
    %26 = arith.maximumf %24, %25 : vector<8x128xf32>
    %27 = arith.truncf %26 : vector<8x128xf32> to vector<8x128xbf16>
    %c1_11 = arith.constant 1 : index
    %c0_12 = arith.constant 0 : index
    %c0_13 = arith.constant 0 : index
    %28 = vector.load %arg3[%c1_11, %c0_12, %c0_13] : memref<5x128x128xbf16, #tpu.memory_space<vmem>>, vector<1x128x128xbf16>
    %29 = vector.shape_cast %28 : vector<1x128x128xbf16> to vector<128x128xbf16>
    %cst_14 = arith.constant dense<0.000000e+00> : vector<8x128xf32>
    %30 = tpu.matmul %27, %29, %cst_14 {dimension_numbers = #tpu.dot_dimension_numbers<[1], [0], [0], [1], [0, 0, 1, 1], [], []>} : vector<8x128xbf16>, vector<128x128xbf16>, vector<8x128xf32> -> vector<8x128xf32>
    %c2 = arith.constant 2 : index
    %c0_15 = arith.constant 0 : index
    %31 = vector.load %arg6[%c2, %c0_15] : memref<8x784xf32, #tpu.memory_space<vmem>>, vector<1x128xf32>
    %32 = vector.broadcast %31 : vector<1x128xf32> to vector<8x128xf32>
    %33 = arith.addf %30, %32 : vector<8x128xf32>
    %cst_16 = arith.constant 0.000000e+00 : f32
    %34 = vector.broadcast %cst_16 : f32 to vector<8x128xf32>
    %35 = arith.maximumf %33, %34 : vector<8x128xf32>
    %36 = arith.truncf %35 : vector<8x128xf32> to vector<8x128xbf16>
    %c2_17 = arith.constant 2 : index
    %c0_18 = arith.constant 0 : index
    %c0_19 = arith.constant 0 : index
    %37 = vector.load %arg3[%c2_17, %c0_18, %c0_19] : memref<5x128x128xbf16, #tpu.memory_space<vmem>>, vector<1x128x128xbf16>
    %38 = vector.shape_cast %37 : vector<1x128x128xbf16> to vector<128x128xbf16>
    %cst_20 = arith.constant dense<0.000000e+00> : vector<8x128xf32>
    %39 = tpu.matmul %36, %38, %cst_20 {dimension_numbers = #tpu.dot_dimension_numbers<[1], [0], [0], [1], [0, 0, 1, 1], [], []>} : vector<8x128xbf16>, vector<128x128xbf16>, vector<8x128xf32> -> vector<8x128xf32>
    %c3 = arith.constant 3 : index
    %c0_21 = arith.constant 0 : index
    %40 = vector.load %arg6[%c3, %c0_21] : memref<8x784xf32, #tpu.memory_space<vmem>>, vector<1x128xf32>
    %41 = vector.broadcast %40 : vector<1x128xf32> to vector<8x128xf32>
    %42 = arith.addf %39, %41 : vector<8x128xf32>
    %cst_22 = arith.constant 0.000000e+00 : f32
    %43 = vector.broadcast %cst_22 : f32 to vector<8x128xf32>
    %44 = arith.maximumf %42, %43 : vector<8x128xf32>
    %45 = arith.truncf %44 : vector<8x128xf32> to vector<8x128xbf16>
    %c3_23 = arith.constant 3 : index
    %c0_24 = arith.constant 0 : index
    %c0_25 = arith.constant 0 : index
    %46 = vector.load %arg3[%c3_23, %c0_24, %c0_25] : memref<5x128x128xbf16, #tpu.memory_space<vmem>>, vector<1x128x128xbf16>
    %47 = vector.shape_cast %46 : vector<1x128x128xbf16> to vector<128x128xbf16>
    %cst_26 = arith.constant dense<0.000000e+00> : vector<8x128xf32>
    %48 = tpu.matmul %45, %47, %cst_26 {dimension_numbers = #tpu.dot_dimension_numbers<[1], [0], [0], [1], [0, 0, 1, 1], [], []>} : vector<8x128xbf16>, vector<128x128xbf16>, vector<8x128xf32> -> vector<8x128xf32>
    %c4 = arith.constant 4 : index
    %c0_27 = arith.constant 0 : index
    %49 = vector.load %arg6[%c4, %c0_27] : memref<8x784xf32, #tpu.memory_space<vmem>>, vector<1x128xf32>
    %50 = vector.broadcast %49 : vector<1x128xf32> to vector<8x128xf32>
    %51 = arith.addf %48, %50 : vector<8x128xf32>
    %cst_28 = arith.constant 0.000000e+00 : f32
    %52 = vector.broadcast %cst_28 : f32 to vector<8x128xf32>
    %53 = arith.maximumf %51, %52 : vector<8x128xf32>
    %54 = arith.truncf %53 : vector<8x128xf32> to vector<8x128xbf16>
    %c4_29 = arith.constant 4 : index
    %c0_30 = arith.constant 0 : index
    %c0_31 = arith.constant 0 : index
    %55 = vector.load %arg3[%c4_29, %c0_30, %c0_31] : memref<5x128x128xbf16, #tpu.memory_space<vmem>>, vector<1x128x128xbf16>
    %56 = vector.shape_cast %55 : vector<1x128x128xbf16> to vector<128x128xbf16>
    %cst_32 = arith.constant dense<0.000000e+00> : vector<8x128xf32>
    %57 = tpu.matmul %54, %56, %cst_32 {dimension_numbers = #tpu.dot_dimension_numbers<[1], [0], [0], [1], [0, 0, 1, 1], [], []>} : vector<8x128xbf16>, vector<128x128xbf16>, vector<8x128xf32> -> vector<8x128xf32>
    %c5 = arith.constant 5 : index
    %c0_33 = arith.constant 0 : index
    %58 = vector.load %arg6[%c5, %c0_33] : memref<8x784xf32, #tpu.memory_space<vmem>>, vector<1x128xf32>
    %59 = vector.broadcast %58 : vector<1x128xf32> to vector<8x128xf32>
    %60 = arith.addf %57, %59 : vector<8x128xf32>
    %cst_34 = arith.constant 0.000000e+00 : f32
    %61 = vector.broadcast %cst_34 : f32 to vector<8x128xf32>
    %62 = arith.maximumf %60, %61 : vector<8x128xf32>
    %63 = arith.truncf %62 : vector<8x128xf32> to vector<8x128xbf16>
    %c0_35 = arith.constant 0 : index
    %c0_36 = arith.constant 0 : index
    %64 = vector.load %arg4[%c0_35, %c0_36] : memref<128x256xbf16, #tpu.memory_space<vmem>>, vector<128x256xbf16>
    %cst_37 = arith.constant dense<0.000000e+00> : vector<8x256xf32>
    %65 = tpu.matmul %63, %64, %cst_37 {dimension_numbers = #tpu.dot_dimension_numbers<[1], [0], [0], [1], [0, 0, 1, 1], [], []>} : vector<8x128xbf16>, vector<128x256xbf16>, vector<8x256xf32> -> vector<8x256xf32>
    %c6 = arith.constant 6 : index
    %c0_38 = arith.constant 0 : index
    %66 = vector.load %arg6[%c6, %c0_38] : memref<8x784xf32, #tpu.memory_space<vmem>>, vector<1x256xf32>
    %67 = vector.broadcast %66 : vector<1x256xf32> to vector<8x256xf32>
    %68 = arith.addf %65, %67 : vector<8x256xf32>
    %cst_39 = arith.constant 0.000000e+00 : f32
    %69 = vector.broadcast %cst_39 : f32 to vector<8x256xf32>
    %70 = arith.maximumf %68, %69 : vector<8x256xf32>
    %71 = arith.truncf %70 : vector<8x256xf32> to vector<8x256xbf16>
    %c0_40 = arith.constant 0 : index
    %c0_41 = arith.constant 0 : index
    %72 = vector.load %arg5[%c0_40, %c0_41] : memref<256x784xbf16, #tpu.memory_space<vmem>>, vector<256x784xbf16>
    %cst_42 = arith.constant dense<0.000000e+00> : vector<8x784xf32>
    %73 = tpu.matmul %71, %72, %cst_42 {dimension_numbers = #tpu.dot_dimension_numbers<[1], [0], [0], [1], [0, 0, 1, 1], [], []>} : vector<8x256xbf16>, vector<256x784xbf16>, vector<8x784xf32> -> vector<8x784xf32>
    %c7 = arith.constant 7 : index
    %c0_43 = arith.constant 0 : index
    %74 = vector.load %arg6[%c7, %c0_43] : memref<8x784xf32, #tpu.memory_space<vmem>>, vector<1x784xf32>
    %75 = vector.broadcast %74 : vector<1x784xf32> to vector<8x784xf32>
    %76 = arith.addf %73, %75 : vector<8x784xf32>
    %cst_44 = arith.constant 0.000000e+00 : f32
    %77 = vector.broadcast %cst_44 : f32 to vector<8x784xf32>
    %78 = arith.maximumf %76, %77 : vector<8x784xf32>
    %c0_45 = arith.constant 0 : index
    %c0_46 = arith.constant 0 : index
    %79 = vector.load %arg7[%c0_45, %c0_46] : memref<8x784xf32, #tpu.memory_space<vmem>>, vector<8x784xf32>
    tpu.vector_store %arg7[%c0_45, %c0_46], %78 {strides = array<i32>} : memref<8x784xf32, #tpu.memory_space<vmem>>, vector<8x784xf32>,
    return
  }
  func.func @transform_0(%arg0: i32) -> (i32, i32) {
    %c0_i32 = arith.constant 0 : i32
    %c0_i32_0 = arith.constant 0 : i32
    return %arg0, %c0_i32 : i32, i32
  }
  func.func @transform_1(%arg0: i32) -> (i32, i32) {
    %c0_i32 = arith.constant 0 : i32
    %c0_i32_0 = arith.constant 0 : i32
    %c0_i32_1 = arith.constant 0 : i32
    return %c0_i32, %c0_i32_0 : i32, i32
  }
  func.func @transform_2(%arg0: i32) -> (i32, i32, i32) {
    %c0_i32 = arith.constant 0 : i32
    %c0_i32_0 = arith.constant 0 : i32
    %c0_i32_1 = arith.constant 0 : i32
    %c0_i32_2 = arith.constant 0 : i32
    return %c0_i32, %c0_i32_0, %c0_i32_1 : i32, i32, i32
  }
  func.func @transform_3(%arg0: i32) -> (i32, i32) {
    %c0_i32 = arith.constant 0 : i32
    %c0_i32_0 = arith.constant 0 : i32
    %c0_i32_1 = arith.constant 0 : i32
    return %c0_i32, %c0_i32_0 : i32, i32
  }
  func.func @transform_4(%arg0: i32) -> (i32, i32) {
    %c0_i32 = arith.constant 0 : i32
    %c0_i32_0 = arith.constant 0 : i32
    %c0_i32_1 = arith.constant 0 : i32
    return %c0_i32, %c0_i32_0 : i32, i32
  }
  func.func @transform_5(%arg0: i32) -> (i32, i32) {
    %c0_i32 = arith.constant 0 : i32
    %c0_i32_0 = arith.constant 0 : i32
    %c0_i32_1 = arith.constant 0 : i32
    return %c0_i32, %c0_i32_0 : i32, i32
  }
  func.func @transform_6(%arg0: i32) -> (i32, i32) {
    %c0_i32 = arith.constant 0 : i32
    %c0_i32_0 = arith.constant 0 : i32
    return %arg0, %c0_i32 : i32, i32
  }
}

</mosaic_0001>

<bundles_post_ra>
// kernel: tpu_custom_call.1
= control target key start
LH: loop header
LB: loop body
LE: loop exit
PB: predicated region body
PF: predicated region fallthrough
CT: control target
= control target key end

     0   :  { %v2337_v1 = vmov 0   ;;  %v2338_v2 = vmov 0.0   ;;  %v2339_v5 = vmov 1   ;;  %vm2340_vm0 = vmmov 0   ;;  %s3003_s0 = inlined_call_operand.vmem [shape: f32[8,2], index: 0, kind: input, shape index: {}]   ;;  %s3004_s1 = inlined_call_operand.vmem [shape: f32[2,128], index: 1, kind: input, shape index: {}]   ;;  %s3005_s2 = inlined_call_operand.vmem [shape: bf16[5,128,128], index: 2, kind: input, shape index: {}]   ;;  %s3006_s3 = inlined_call_operand.vmem [shape: bf16[128,256], index: 3, kind: input, shape index: {}]   ;;  %s3007_s4 = inlined_call_operand.vmem [shape: bf16[256,784], index: 4, kind: input, shape index: {}]   ;;  %s3008_s5 = inlined_call_operand.vmem [shape: f32[8,784], index: 5, kind: input, shape index: {}]   ;;  %s3009_s6 = inlined_call_operand.hbm [shape: f32[8,784], index: 6, kind: output, shape index: {}]  }
   0x1   :  { %v25_v0 = vld [vmem:[%s3003_s0] sm:$0xff]  ;;  %2087 = vset.pattern.permute.xlu0 %v2337_v1  ;;  %1982 = vmatprep.subr.bf16.mxu0 %v2338_v2  ;;  %v2090_v4 = vld [vmem:[%s3005_s2 + $0x8] sm:$0xff]   ;;  %v2091_v6 = vld [vmem:[%s3005_s2 + $0x10] sm:$0xff]  }
   0x2   :  { %v2089_v3 = vld [vmem:[%s3005_s2] sm:$0xff]   ;;  %29 = vperm.xlu0 %2087, %v25_v0   ;;  %2002 = vmatprep.subr.bf16.mxu1 %v2338_v2  ;;  %v2092_v7 = vld [vmem:[%s3005_s2 + $0x18] sm:$0xff]   ;;  %v2094_v10 = vld [vmem:[%s3005_s2 + $0x28] sm:$0xff]  }
   0x3   :  { %1983 = vmatpush3.bf16.msra.mxu0 %v2089_v3  ;;  %1998 = vmatprep.mubr.msk.bf16.mxu0 %vm2340_vm0, %v2338_v2  ;;  %v2093_v8 = vld [vmem:[%s3005_s2 + $0x20] sm:$0xff]   ;;  %v2098_v11 = vld [vmem:[%s3005_s2 + $0x48] sm:$0xff]   ;;  %v2095_v12 = vld [vmem:[%s3005_s2 + $0x30] sm:$0xff]  }
   0x4   :  { %1984 = vmatprep.subr.bf16.mxu0 %v2338_v2  ;;  %2018 = vmatprep.mubr.msk.bf16.mxu1 %vm2340_vm0, %v2338_v2  ;;  %v2097_v9 = vld [vmem:[%s3005_s2 + $0x40] sm:$0xff]   ;;  %v2099_v13 = vld [vmem:[%s3005_s2 + $0x50] sm:$0xff]   ;;  %v2096_v14 = vld [vmem:[%s3005_s2 + $0x38] sm:$0xff]  }
   0x5   :  { %2003 = vmatpush3.bf16.msra.mxu1 %v2097_v9  ;;  %v2100_v15 = vld [vmem:[%s3005_s2 + $0x58] sm:$0xff]   ;;  %v2101_v16 = vld [vmem:[%s3005_s2 + $0x60] sm:$0xff]   ;;  %v2102_v17 = vld [vmem:[%s3005_s2 + $0x68] sm:$0xff]  }
   0x6   :  { %2088 = vset.pattern.permute.xlu0 %v2339_v5  ;;  %2004 = vmatprep.subr.bf16.mxu1 %v2338_v2 }
   0x7   :  { %38 = vperm.xlu0 %2088, %v25_v0   ;;  %1985 = vmatpush3.bf16.msra.mxu0 %v2090_v4 }
   0x8   :  { %1986 = vmatprep.subr.bf16.mxu0 %v2338_v2 }
   0x9   :  { %2005 = vmatpush3.bf16.msra.mxu1 %v2098_v11 }
   0xa   :  { %2006 = vmatprep.subr.bf16.mxu1 %v2338_v2 }
   0xb   :  { %1987 = vmatpush3.bf16.msra.mxu0 %v2091_v6 }
   0xc   :  { %1988 = vmatprep.subr.bf16.mxu0 %v2338_v2 }
   0xd   :  { %2007 = vmatpush3.bf16.msra.mxu1 %v2099_v13 }
   0xe   :  { %2008 = vmatprep.subr.bf16.mxu1 %v2338_v2 }
   0xf   :  { %1989 = vmatpush3.bf16.msra.mxu0 %v2092_v7 }
  0x10   :  { %1990 = vmatprep.subr.bf16.mxu0 %v2338_v2 }
  0x11   :  { %2009 = vmatpush3.bf16.msra.mxu1 %v2100_v15 }
  0x12   :  { %2010 = vmatprep.subr.bf16.mxu1 %v2338_v2 }
  0x13   :  { %1991 = vmatpush3.bf16.msra.mxu0 %v2093_v8 }
  0x14   :  { %1992 = vmatprep.subr.bf16.mxu0 %v2338_v2 }
  0x15   :  { %2011 = vmatpush3.bf16.msra.mxu1 %v2101_v16 }
  0x16   :  { %2012 = vmatprep.subr.bf16.mxu1 %v2338_v2 }
  0x17   :  { %1993 = vmatpush3.bf16.msra.mxu0 %v2094_v10 }
  0x18   :  { %1994 = vmatprep.subr.bf16.mxu0 %v2338_v2 }
  0x19   :  { %2013 = vmatpush3.bf16.msra.mxu1 %v2102_v17 }
  0x1a   :  { %2014 = vmatprep.subr.bf16.mxu1 %v2338_v2 }
  0x1b   :  { %1995 = vmatpush3.bf16.msra.mxu0 %v2095_v12 }
  0x1c   :  { %1996 = vmatprep.subr.bf16.mxu0 %v2338_v2 }
  0x1f   :  { %1997 = vmatpush3.bf16.msra.mxu0 %v2096_v14 }
  0x20   :  { %2022 = vmatprep.subr.bf16.mxu0 %v2338_v2 }
  0x21   :  { %11 = vsyncpa [#allocation3], 0  ;;  %v32_v18 = vlaneseq  ;;  %v26_v22 = vld [vmem:[%s3004_s1] sm:$0x3]  ;;  %v2103_v34 = vld [vmem:[%s3005_s2 + $0x70] sm:$0xff]   ;;  %vm1664_vm1 = vcmask 130048  }
  0x22   :  { %v47_v29 = vld [vmem:[%s3008_s5] ss:$0 sm:$0xff]  ;;  %2015 = vmatpush3.bf16.msra.mxu1 %v2103_v34  ;;  %v2104_v35 = vld [vmem:[%s3005_s2 + $0x78] sm:$0xff]   ;;  %v2106_v37 = vld [vmem:[%s3005_s2 + $0x88] sm:$0xff]  }
  0x23   :  { %v2443_v19 = vshrl.u32 %v32_v18, 7  ;;  %2016 = vmatprep.subr.bf16.mxu1 %v2338_v2  ;;  %v2105_v36 = vld [vmem:[%s3005_s2 + $0x80] sm:$0xff]   ;;  %v2107_v38 = vld [vmem:[%s3005_s2 + $0x90] sm:$0xff]   ;;  %v2108_v39 = vld [vmem:[%s3005_s2 + $0x98] sm:$0xff]  }
  0x24   :  { %v2109_v40 = vld [vmem:[%s3005_s2 + $0xa0] sm:$0xff]   ;;  %v2110_v41 = vld [vmem:[%s3005_s2 + $0xa8] sm:$0xff]   ;;  %v2111_v50 = vld [vmem:[%s3005_s2 + $0xb0] sm:$0xff]  }
  0x25   :  { %v2446_v20 = vsub.s32 0, %v2443_v19  ;;  %v2449_v21 = vsub.s32 1, %v2443_v19  ;;  %v67_v42 = vld [vmem:[%s3008_s5 + $0x1] ss:$0 sm:$0xff]  ;;  %v2112_v51 = vld [vmem:[%s3005_s2 + $0xb8] sm:$0xff]   ;;  %v2114_v53 = vld [vmem:[%s3005_s2 + $0xc8] sm:$0xff]  }
  0x26   :  { %2017 = vmatpush3.bf16.msra.mxu1 %v2104_v35  ;;  %v2113_v52 = vld [vmem:[%s3005_s2 + $0xc0] sm:$0xff]   ;;  %v2115_v54 = vld [vmem:[%s3005_s2 + $0xd0] sm:$0xff]   ;;  %v2116_v55 = vld [vmem:[%s3005_s2 + $0xd8] sm:$0xff]  }
  0x27   :  { %v35_v24 = vrot.slane %v26_v22, %v2446_v20  ;;  %v44_v25 = vrot.slane %v26_v22, %v2449_v21  ;;  %2042 = vmatprep.subr.bf16.mxu1 %v2338_v2  ;;  %v2117_v56 = vld [vmem:[%s3005_s2 + $0xe0] sm:$0xff]   ;;  %v2118_v57 = vld [vmem:[%s3005_s2 + $0xe8] sm:$0xff]   ;;  %v2119_v4 = vld [vmem:[%s3005_s2 + $0xf0] sm:$0xff]  }
  0x28   :  { %v175_v58 = vld [vmem:[%s3008_s5 + $0x2] ss:$0 sm:$0xff]  ;;  %v2120_v5 = vld [vmem:[%s3005_s2 + $0xf8] sm:$0xff]   ;;  %v2122_v7 = vld [vmem:[%s3005_s2 + $0x108] sm:$0xff]  }
  0x29   :  { %v2121_v6 = vld [vmem:[%s3005_s2 + $0x100] sm:$0xff]   ;;  %v2123_v8 = vld [vmem:[%s3005_s2 + $0x110] sm:$0xff]   ;;  %v2124_v9 = vld [vmem:[%s3005_s2 + $0x118] sm:$0xff]  }
  0x2a   :  { %v2125_v10 = vld [vmem:[%s3005_s2 + $0x120] sm:$0xff]   ;;  %v2126_v11 = vld [vmem:[%s3005_s2 + $0x128] sm:$0xff]   ;;  %v2144_v34 = vld [vmem:[%s3006_s3 + $0x50] ss:$8 sps:$4 sm:$0xff]  }
  0x2b   :  { %v283_v12 = vld [vmem:[%s3008_s5 + $0x3] ss:$0 sm:$0xff]  ;;  %v2149_v35 = vld [vmem:[%s3006_s3 + $0x64] ss:$8 sps:$4 sm:$0xff]  }
  0x81   :  { %v30_v23 = vpop.permute.xlu0 %29 }
  0x82   :  { %v36_v27 = vmul.f32 %v35_v24, %v30_v23  ;;  %v2127_v23 = vld [vmem:[%s3005_s2 + $0x130] sm:$0xff]   ;;  %v2128_v24 = vld [vmem:[%s3005_s2 + $0x138] sm:$0xff]  }
  0x86   :  { %v39_v26 = vpop.permute.xlu0 %38 }
  0x87   :  { %v45_v28 = vmul.f32 %v44_v25, %v39_v26  ;;  %v2129_v25 = vld [vmem:[%s3006_s3] ss:$8 sps:$4 sm:$0xff]   ;;  %v2134_v26 = vld [vmem:[%s3006_s3 + $0x14] ss:$8 sps:$4 sm:$0xff]  }
  0x89   :  { %v46_v30 = vadd.f32 %v45_v28, %v36_v27  ;;  %v2137_v27 = vld [vmem:[%s3006_s3 + $0x24] ss:$8 sps:$4 sm:$0xff]   ;;  %v2135_v28 = vld [vmem:[%s3006_s3 + $0x20] ss:$8 sps:$4 sm:$0xff]  }
  0x8b   :  { %v48_v31 = vadd.f32 %v47_v29, %v46_v30  ;;  %v2140_v29 = vld [vmem:[%s3006_s3 + $0x34] ss:$8 sps:$4 sm:$0xff]   ;;  %v2138_v30 = vld [vmem:[%s3006_s3 + $0x30] ss:$8 sps:$4 sm:$0xff]  }
  0x8d   :  { %v49_v32 = vmax.f32 %v48_v31, 0.0  ;;  %v2143_v31 = vld [vmem:[%s3006_s3 + $0x44] ss:$8 sps:$4 sm:$0xff]  }
  0x8f   :  { %v50_v33 = vpack.c.bf16 %v49_v32, %v49_v32  ;;  %v2141_v32 = vld [vmem:[%s3006_s3 + $0x40] ss:$8 sps:$4 sm:$0xff]  }
  0x91   :  { %1999 = vmatmul.mubr.bf16.vlgmr.msra.gmra.mrb[0].mxu0 %v50_v33  ;;  %v2146_v33 = vld [vmem:[%s3006_s3 + $0x54] ss:$8 sps:$4 sm:$0xff]  }
  0x92   :  { %2038 = vmatprep.mubr.msk.bf16.mxu0 %vm2340_vm0, %v2338_v2  ;;  %2023 = vmatpush3.bf16.msra.mxu0 %v2105_v36  ;;  %v2147_v36 = vld [vmem:[%s3006_s3 + $0x60] ss:$8 sps:$4 sm:$0xff]  }
  0x93   :  { %2024 = vmatprep.subr.bf16.mxu0 %v2338_v2 }
  0x96   :  { %2025 = vmatpush3.bf16.msra.mxu0 %v2106_v37  ;;  %v391_v37 = vld [vmem:[%s3008_s5 + $0x4] ss:$0 sm:$0xff] }
  0x97   :  { %2026 = vmatprep.subr.bf16.mxu0 %v2338_v2 }
  0x9a   :  { %2027 = vmatpush3.bf16.msra.mxu0 %v2107_v38 }
  0x9b   :  { %2028 = vmatprep.subr.bf16.mxu0 %v2338_v2 }
  0x9e   :  { %2029 = vmatpush3.bf16.msra.mxu0 %v2108_v39 }
  0x9f   :  { %2030 = vmatprep.subr.bf16.mxu0 %v2338_v2 }
  0xa2   :  { %2031 = vmatpush3.bf16.msra.mxu0 %v2109_v40 }
  0xa3   :  { %2032 = vmatprep.subr.bf16.mxu0 %v2338_v2 }
  0xa6   :  { %2033 = vmatpush3.bf16.msra.mxu0 %v2110_v41 }
  0xa7   :  { %2034 = vmatprep.subr.bf16.mxu0 %v2338_v2 }
  0xaa   :  { %2035 = vmatpush3.bf16.msra.mxu0 %v2111_v50  ;;  %v2161_v50 = vld [vmem:[%s3007_s4 + $0x3c] ss:$28 sps:$4 sm:$0xff]  }
  0xab   :  { %2036 = vmatprep.subr.bf16.mxu0 %v2338_v2 }
  0xae   :  { %2037 = vmatpush3.bf16.msra.mxu0 %v2112_v51  ;;  %v2159_v51 = vld [vmem:[%s3007_s4 + $0x38] ss:$28 sps:$4 sm:$0xff]  }
  0xaf   :  { %2062 = vmatprep.subr.bf16.mxu0 %v2338_v2 }
 0x164   :  { %v150_v43 = vpop.f32.mrb[0].mxu0 }
 0x165   :  { %v151_v44 = vadd.f32 %v150_v43, %v67_v42  ;;  %v2000_v45 = vpop.f32.mrb[1].mxu0 }
 0x166   :  { %v153_v46 = vpop.f32.mrb[2].mxu0  ;;  %v2152_v45 = vld [vmem:[%s3006_s3 + $0x74] ss:$8 sps:$4 sm:$0xff]  }
 0x167   :  { %v156_v47 = vmax.f32 %v151_v44, 0.0  ;;  %v2001_v48 = vpop.f32.mrb[3].mxu0  ;;  %v2150_v46 = vld [vmem:[%s3006_s3 + $0x70] ss:$8 sps:$4 sm:$0xff]  }
 0x168   :  { %v2155_v48 = vld [vmem:[%s3007_s4 + $0x4] ss:$28 sps:$4 sm:$0xff]  }
 0x169   :  { %v157_v49 = vpack.c.bf16 %v156_v47, %v156_v47  ;;  %v2153_v47 = vld [vmem:[%s3007_s4] ss:$28 sps:$4 sm:$0xff]  }
 0x16b   :  { %2019 = vmatmul.mubr.bf16.vlgmr.msra.gmra.mrb[0].mxu1 %v157_v49  ;;  %v2158_v49 = vld [vmem:[%s3007_s4 + $0xc] ss:$28 sps:$4 sm:$0xff]  }
 0x16c   :  { %2058 = vmatprep.mubr.msk.bf16.mxu1 %vm2340_vm0, %v2338_v2  ;;  %2043 = vmatpush3.bf16.msra.mxu1 %v2113_v52  ;;  %v2167_v52 = vld [vmem:[%s3007_s4 + $0x74] ss:$28 sps:$4 sm:$0xff]  }
 0x16d   :  { %2044 = vmatprep.subr.bf16.mxu1 %v2338_v2 }
 0x170   :  { %2045 = vmatpush3.bf16.msra.mxu1 %v2114_v53  ;;  %v2165_v53 = vld [vmem:[%s3007_s4 + $0x70] ss:$28 sps:$4 sm:$0xff]  }
 0x171   :  { %2046 = vmatprep.subr.bf16.mxu1 %v2338_v2 }
 0x174   :  { %2047 = vmatpush3.bf16.msra.mxu1 %v2115_v54  ;;  %v2173_v54 = vld [vmem:[%s3007_s4 + $0xac] ss:$28 sps:$4 sm:$0xff]  }
 0x175   :  { %2048 = vmatprep.subr.bf16.mxu1 %v2338_v2 }
 0x178   :  { %2049 = vmatpush3.bf16.msra.mxu1 %v2116_v55  ;;  %v2171_v55 = vld [vmem:[%s3007_s4 + $0xa8] ss:$28 sps:$4 sm:$0xff]  }
 0x179   :  { %2050 = vmatprep.subr.bf16.mxu1 %v2338_v2 }
 0x17c   :  { %2051 = vmatpush3.bf16.msra.mxu1 %v2117_v56  ;;  %v2179_v56 = vld [vmem:[%s3007_s4 + $0xe4] ss:$28 sps:$4 sm:$0xff]  }
 0x17d   :  { %2052 = vmatprep.subr.bf16.mxu1 %v2338_v2 }
 0x180   :  { %2053 = vmatpush3.bf16.msra.mxu1 %v2118_v57  ;;  %v2177_v57 = vld [vmem:[%s3007_s4 + $0xe0] ss:$28 sps:$4 sm:$0xff]  }
 0x181   :  { %2054 = vmatprep.subr.bf16.mxu1 %v2338_v2 }
 0x184   :  { %2055 = vmatpush3.bf16.msra.mxu1 %v2119_v4  ;;  %v2209_v4 = vld [vmem:[%s3007_s4 + $0x1fc] ss:$28 sps:$4 sm:$0xff]  }
 0x185   :  { %2056 = vmatprep.subr.bf16.mxu1 %v2338_v2 }
 0x188   :  { %2057 = vmatpush3.bf16.msra.mxu1 %v2120_v5  ;;  %v2207_v5 = vld [vmem:[%s3007_s4 + $0x1f8] ss:$28 sps:$4 sm:$0xff]  }
 0x23e   :  { %v258_v59 = vpop.f32.mrb[0].mxu1 }
 0x23f   :  { %v259_v60 = vadd.f32 %v258_v59, %v175_v58  ;;  %v2020_v61 = vpop.f32.mrb[1].mxu1  ;;  %v2185_v58 = vld [vmem:[%s3007_s4 + $0x11c] ss:$28 sps:$4 sm:$0xff]  }
 0x240   :  { %v261_v62 = vpop.f32.mrb[2].mxu1  ;;  %v2183_v59 = vld [vmem:[%s3007_s4 + $0x118] ss:$28 sps:$4 sm:$0xff]   ;;  %v2189_v61 = vld [vmem:[%s3007_s4 + $0x150] ss:$28 sps:$4 sm:$0xff]  }
 0x241   :  { %v264_v63 = vmax.f32 %v259_v60, 0.0  ;;  %v2021_v0 = vpop.f32.mrb[3].mxu1  ;;  %v2191_v60 = vld [vmem:[%s3007_s4 + $0x154] ss:$28 sps:$4 sm:$0xff]   ;;  %v2197_v62 = vld [vmem:[%s3007_s4 + $0x18c] ss:$28 sps:$4 sm:$0xff]  }
 0x242   :  { %v2203_v0 = vld [vmem:[%s3007_s4 + $0x1c4] ss:$28 sps:$4 sm:$0xff]  }
 0x243   :  { %v265_v3 = vpack.c.bf16 %v264_v63, %v264_v63  ;;  %v2195_v63 = vld [vmem:[%s3007_s4 + $0x188] ss:$28 sps:$4 sm:$0xff]  }
 0x245   :  { %2039 = vmatmul.mubr.bf16.vlgmr.msra.gmra.mrb[4].mxu0 %v265_v3  ;;  %v2201_v3 = vld [vmem:[%s3007_s4 + $0x1c0] ss:$28 sps:$4 sm:$0xff]  }
 0x246   :  { %2078 = vmatprep.mubr.msk.bf16.mxu0 %vm2340_vm0, %v2338_v2  ;;  %2063 = vmatpush3.bf16.msra.mxu0 %v2121_v6  ;;  %v2215_v6 = vld [vmem:[%s3007_s4 + $0x234] ss:$28 sps:$4 sm:$0xff]  }
 0x247   :  { %2064 = vmatprep.subr.bf16.mxu0 %v2338_v2 }
 0x24a   :  { %2065 = vmatpush3.bf16.msra.mxu0 %v2122_v7  ;;  %v2213_v7 = vld [vmem:[%s3007_s4 + $0x230] ss:$28 sps:$4 sm:$0xff]  }
 0x24b   :  { %2066 = vmatprep.subr.bf16.mxu0 %v2338_v2 }
 0x24e   :  { %2067 = vmatpush3.bf16.msra.mxu0 %v2123_v8  ;;  %v2221_v8 = vld [vmem:[%s3007_s4 + $0x26c] ss:$28 sps:$4 sm:$0xff]  }
 0x24f   :  { %2068 = vmatprep.subr.bf16.mxu0 %v2338_v2 }
 0x252   :  { %2069 = vmatpush3.bf16.msra.mxu0 %v2124_v9  ;;  %v2219_v9 = vld [vmem:[%s3007_s4 + $0x268] ss:$28 sps:$4 sm:$0xff]  }
 0x253   :  { %2070 = vmatprep.subr.bf16.mxu0 %v2338_v2 }
 0x256   :  { %2071 = vmatpush3.bf16.msra.mxu0 %v2125_v10  ;;  %v2227_v10 = vld [vmem:[%s3007_s4 + $0x2a4] ss:$28 sps:$4 sm:$0xff]  }
 0x257   :  { %2072 = vmatprep.subr.bf16.mxu0 %v2338_v2 }
 0x25a   :  { %2073 = vmatpush3.bf16.msra.mxu0 %v2126_v11  ;;  %v2225_v11 = vld [vmem:[%s3007_s4 + $0x2a0] ss:$28 sps:$4 sm:$0xff]  }
 0x25b   :  { %2074 = vmatprep.subr.bf16.mxu0 %v2338_v2 }
 0x25e   :  { %2075 = vmatpush3.bf16.msra.mxu0 %v2127_v23 }
 0x25f   :  { %2076 = vmatprep.subr.bf16.mxu0 %v2338_v2  ;;  %v2132_v2 = vld [vmem:[%s3006_s3 + $0x10] ss:$8 sps:$4 sm:$0xff]  }
 0x262   :  { %2077 = vmatpush3.bf16.msra.mxu0 %v2128_v24  ;;  %v2156_v24 = vld [vmem:[%s3007_s4 + $0x8] ss:$28 sps:$4 sm:$0xff]  }
 0x263   :  { %1488 = vmatprep.subr.bf16.mxu0 %v2155_v48  ;;  %v2236_v48 = vld [vmem:[%s3007_s4 + $0x2e4] ss:$28 sps:$4 sm:$0xff]  }
 0x318   :  { %v366_v13 = vpop.f32.mrb[4].mxu0 }
 0x319   :  { %v367_v14 = vadd.f32 %v366_v13, %v283_v12  ;;  %v2040_v15 = vpop.f32.mrb[5].mxu0  ;;  %v2233_v12 = vld [vmem:[%s3007_s4 + $0x2dc] ss:$28 sps:$4 sm:$0xff]  }
 0x31a   :  { %v369_v16 = vpop.f32.mrb[6].mxu0  ;;  %v2231_v13 = vld [vmem:[%s3007_s4 + $0x2d8] ss:$28 sps:$4 sm:$0xff]  }
 0x31b   :  { %v372_v17 = vmax.f32 %v367_v14, 0.0  ;;  %v2041_v18 = vpop.f32.mrb[7].mxu0  ;;  %v499_v14 = vld [vmem:[%s3008_s5 + $0x5] ss:$0 sm:$0xff] }
 0x31d   :  { %v373_v22 = vpack.c.bf16 %v372_v17, %v372_v17 }
 0x31f   :  { %2059 = vmatmul.mubr.bf16.vlgmr.msra.gmra.mrb[4].mxu1 %v373_v22 }
 0x320   :  { %731 = vmatprep.mubr.bf16.mxu1 %v2337_v1  ;;  %v2131_v1 = vld [vmem:[%s3006_s3 + $0x4] ss:$8 sps:$4 sm:$0xff]  }
 0x321   :  { %699 = vmatprep.subr.bf16.mxu1 %v2131_v1  ;;  %v2164_v1 = vld [vmem:[%s3007_s4 + $0x44] ss:$28 sps:$4 sm:$0xff]  }
 0x322   :  { %700 = vmatpush1.bf16.msra.mxu1 %v2129_v25 }
 0x323   :  { %701 = vmatprep.subr.bf16.mxu1 %v2134_v26  ;;  %v2162_v26 = vld [vmem:[%s3007_s4 + $0x40] ss:$28 sps:$4 sm:$0xff]  }
 0x326   :  { %702 = vmatpush1.bf16.msra.mxu1 %v2132_v2  ;;  %v2170_v2 = vld [vmem:[%s3007_s4 + $0x7c] ss:$28 sps:$4 sm:$0xff]  }
 0x327   :  { %703 = vmatprep.subr.bf16.mxu1 %v2137_v27  ;;  %v2168_v27 = vld [vmem:[%s3007_s4 + $0x78] ss:$28 sps:$4 sm:$0xff]  }
 0x32a   :  { %704 = vmatpush1.bf16.msra.mxu1 %v2135_v28  ;;  %v2176_v28 = vld [vmem:[%s3007_s4 + $0xb4] ss:$28 sps:$4 sm:$0xff]  }
 0x32b   :  { %705 = vmatprep.subr.bf16.mxu1 %v2140_v29  ;;  %v2174_v29 = vld [vmem:[%s3007_s4 + $0xb0] ss:$28 sps:$4 sm:$0xff]  }
 0x32e   :  { %706 = vmatpush1.bf16.msra.mxu1 %v2138_v30  ;;  %v2182_v30 = vld [vmem:[%s3007_s4 + $0xec] ss:$28 sps:$4 sm:$0xff]  }
 0x32f   :  { %707 = vmatprep.subr.bf16.mxu1 %v2143_v31  ;;  %v2180_v31 = vld [vmem:[%s3007_s4 + $0xe8] ss:$28 sps:$4 sm:$0xff]  }
 0x332   :  { %708 = vmatpush1.bf16.msra.mxu1 %v2141_v32  ;;  %v2188_v32 = vld [vmem:[%s3007_s4 + $0x124] ss:$28 sps:$4 sm:$0xff]  }
 0x333   :  { %709 = vmatprep.subr.bf16.mxu1 %v2146_v33  ;;  %v2186_v33 = vld [vmem:[%s3007_s4 + $0x120] ss:$28 sps:$4 sm:$0xff]  }
 0x336   :  { %710 = vmatpush1.bf16.msra.mxu1 %v2144_v34  ;;  %v2194_v34 = vld [vmem:[%s3007_s4 + $0x15c] ss:$28 sps:$4 sm:$0xff]  }
 0x337   :  { %711 = vmatprep.subr.bf16.mxu1 %v2149_v35  ;;  %v2192_v35 = vld [vmem:[%s3007_s4 + $0x158] ss:$28 sps:$4 sm:$0xff]  }
 0x33a   :  { %712 = vmatpush1.bf16.msra.mxu1 %v2147_v36  ;;  %v2200_v36 = vld [vmem:[%s3007_s4 + $0x194] ss:$28 sps:$4 sm:$0xff]  }
 0x33b   :  { %713 = vmatprep.subr.bf16.mxu1 %v2152_v45  ;;  %v2222_v45 = vld [vmem:[%s3007_s4 + $0x270] ss:$28 sps:$4 sm:$0xff]  }
 0x33e   :  { %714 = vmatpush1.bf16.msra.mxu1 %v2150_v46  ;;  %v2230_v46 = vld [vmem:[%s3007_s4 + $0x2ac] ss:$28 sps:$4 sm:$0xff]  }
 0x33f   :  { %1529 = vmatprep.subr.bf16.mxu1 %v2158_v49  ;;  %v2234_v49 = vld [vmem:[%s3007_s4 + $0x2e0] ss:$28 sps:$4 sm:$0xff]  }
 0x3f2   :  { %v474_v38 = vpop.f32.mrb[4].mxu1 }
 0x3f3   :  { %v475_v39 = vadd.f32 %v474_v38, %v391_v37  ;;  %v2060_v40 = vpop.f32.mrb[5].mxu1  ;;  %v2198_v37 = vld [vmem:[%s3007_s4 + $0x190] ss:$28 sps:$4 sm:$0xff]  }
 0x3f4   :  { %v477_v41 = vpop.f32.mrb[6].mxu1  ;;  %v2206_v38 = vld [vmem:[%s3007_s4 + $0x1cc] ss:$28 sps:$4 sm:$0xff]   ;;  %v2212_v40 = vld [vmem:[%s3007_s4 + $0x204] ss:$28 sps:$4 sm:$0xff]  }
 0x3f5   :  { %v480_v42 = vmax.f32 %v475_v39, 0.0  ;;  %v2061_v43 = vpop.f32.mrb[7].mxu1  ;;  %v2204_v39 = vld [vmem:[%s3007_s4 + $0x1c8] ss:$28 sps:$4 sm:$0xff]   ;;  %v2210_v41 = vld [vmem:[%s3007_s4 + $0x200] ss:$28 sps:$4 sm:$0xff]  }
 0x3f6   :  { %v2216_v43 = vld [vmem:[%s3007_s4 + $0x238] ss:$28 sps:$4 sm:$0xff]  }
 0x3f7   :  { %v481_v44 = vpack.c.bf16 %v480_v42, %v480_v42  ;;  %v2218_v42 = vld [vmem:[%s3007_s4 + $0x23c] ss:$28 sps:$4 sm:$0xff]  }
 0x3f9   :  { %2079 = vmatmul.mubr.bf16.vlgmr.msra.gmra.mrb[8].mxu0 %v481_v44  ;;  %v2224_v44 = vld [vmem:[%s3007_s4 + $0x274] ss:$28 sps:$4 sm:$0xff]  }
 0x3fa   :  { %1489 = vmatpush1.bf16.msra.mxu0 %v2153_v47  ;;  %v2228_v47 = vld [vmem:[%s3007_s4 + $0x2a8] ss:$28 sps:$4 sm:$0xff]  }
 0x3fb   :  { %1490 = vmatprep.subr.bf16.mxu0 %v2161_v50  ;;  %v2239_v50 = vld [vmem:[%s3007_s4 + $0x314] ss:$28 sps:$4 sm:$0xff]  }
 0x3fe   :  { %1491 = vmatpush1.bf16.msra.mxu0 %v2159_v51  ;;  %v2242_v51 = vld [vmem:[%s3007_s4 + $0x31c] ss:$28 sps:$4 sm:$0xff]  }
 0x3ff   :  { %1492 = vmatprep.subr.bf16.mxu0 %v2167_v52  ;;  %v2237_v52 = vld [vmem:[%s3007_s4 + $0x310] ss:$28 sps:$4 sm:$0xff]  }
 0x402   :  { %1493 = vmatpush1.bf16.msra.mxu0 %v2165_v53  ;;  %v2240_v53 = vld [vmem:[%s3007_s4 + $0x318] ss:$28 sps:$4 sm:$0xff]  }
 0x403   :  { %1494 = vmatprep.subr.bf16.mxu0 %v2173_v54  ;;  %v2245_v54 = vld [vmem:[%s3007_s4 + $0x34c] ss:$28 sps:$4 sm:$0xff]  }
 0x406   :  { %1495 = vmatpush1.bf16.msra.mxu0 %v2171_v55  ;;  %v2248_v55 = vld [vmem:[%s3007_s4 + $0x354] ss:$28 sps:$4 sm:$0xff]  }
 0x407   :  { %1496 = vmatprep.subr.bf16.mxu0 %v2179_v56  ;;  %v2243_v56 = vld [vmem:[%s3007_s4 + $0x348] ss:$28 sps:$4 sm:$0xff]  }
 0x40a   :  { %1497 = vmatpush1.bf16.msra.mxu0 %v2177_v57  ;;  %v2246_v57 = vld [vmem:[%s3007_s4 + $0x350] ss:$28 sps:$4 sm:$0xff]  }
 0x40b   :  { %1498 = vmatprep.subr.bf16.mxu0 %v2185_v58  ;;  %v2251_v58 = vld [vmem:[%s3007_s4 + $0x14] ss:$28 sps:$4 sm:$0xff]  }
 0x40e   :  { %1499 = vmatpush1.bf16.msra.mxu0 %v2183_v59  ;;  %v2252_v59 = vld [vmem:[%s3007_s4 + $0x1d8] ss:$28 sps:$4 sm:$0xff]  }
 0x40f   :  { %1500 = vmatprep.subr.bf16.mxu0 %v2191_v60  ;;  %v1784_v60 = vld [vmem:[%s3008_s5 + $0x6] ss:$8 sm:$0x3] }
 0x412   :  { %1501 = vmatpush1.bf16.msra.mxu0 %v2189_v61  ;;  %v612_v61 = vrot.slane %v1784_v60, %v2446_v20 }
 0x413   :  { %1502 = vmatprep.subr.bf16.mxu0 %v2197_v62  ;;  %v616_v62 = vrot.slane %v1784_v60, %v2449_v21 }
 0x416   :  { %1503 = vmatpush1.bf16.msra.mxu0 %v2195_v63 }
 0x417   :  { %1504 = vmatprep.subr.bf16.mxu0 %v2203_v0 }
 0x41a   :  { %1505 = vmatpush1.bf16.msra.mxu0 %v2201_v3 }
 0x41b   :  { %1506 = vmatprep.subr.bf16.mxu0 %v2209_v4 }
 0x41e   :  { %1507 = vmatpush1.bf16.msra.mxu0 %v2207_v5 }
 0x41f   :  { %1508 = vmatprep.subr.bf16.mxu0 %v2215_v6 }
 0x422   :  { %1509 = vmatpush1.bf16.msra.mxu0 %v2213_v7 }
 0x423   :  { %1510 = vmatprep.subr.bf16.mxu0 %v2221_v8 }
 0x426   :  { %1511 = vmatpush1.bf16.msra.mxu0 %v2219_v9 }
 0x427   :  { %1512 = vmatprep.subr.bf16.mxu0 %v2227_v10  ;;  %v2249_v10 = vld [vmem:[%s3007_s4 + $0x10] ss:$28 sps:$4 sm:$0xff]  }
 0x42a   :  { %1513 = vmatpush1.bf16.msra.mxu0 %v2225_v11  ;;  %v2253_v11 = vld [vmem:[%s3007_s4 + $0x18] ss:$28 sps:$4 sm:$0xff]  }
 0x42b   :  { %1514 = vmatprep.subr.bf16.mxu0 %v2233_v12 }
 0x42e   :  { %1515 = vmatpush1.bf16.msra.mxu0 %v2231_v13  ;;  %v2256_v13 = vld [vmem:[%s3007_s4 + $0x4c] ss:$28 sps:$4 sm:$0xff]  }
 0x42f   :  { %1516 = vmatprep.subr.bf16.mxu0 %v2239_v50  ;;  %v2303_v50 = vld [vmem:[%s3007_s4 + $0x2b4] ss:$28 sps:$4 sm:$0xff]  }
 0x432   :  { %1517 = vmatpush1.bf16.msra.mxu0 %v2237_v52  ;;  %v2306_v52 = vld [vmem:[%s3007_s4 + $0x2ec] ss:$28 sps:$4 sm:$0xff]  }
 0x433   :  { %1518 = vmatprep.subr.bf16.mxu0 %v2245_v54  ;;  %v2309_v54 = vld [vmem:[%s3007_s4 + $0x324] ss:$28 sps:$4 sm:$0xff]  }
 0x436   :  { %1519 = vmatpush1.bf16.msra.mxu0 %v2243_v56  ;;  %v2312_v56 = vld [vmem:[%s3007_s4 + $0x35c] ss:$28 sps:$4 sm:$0xff]  }
 0x437   :  { %1570 = vmatprep.subr.bf16.mxu0 %v2251_v58  ;;  %v1801_v58 = vld [vmem:[%s3008_s5 + $0x7] ss:$8 sm:$0xf] }
 0x4cc   :  { %v582_v15 = vpop.f32.mrb[8].mxu0 }
 0x4cd   :  { %v583_v16 = vadd.f32 %v582_v15, %v499_v14  ;;  %v2080_v17 = vpop.f32.mrb[9].mxu0  ;;  %v2257_v14 = vld [vmem:[%s3007_s4 + $0x210] ss:$28 sps:$4 sm:$0xff]   ;;  %v2254_v15 = vld [vmem:[%s3007_s4 + $0x48] ss:$28 sps:$4 sm:$0xff]  }
 0x4ce   :  { %v585_v18 = vpop.f32.mrb[10].mxu0  ;;  %v2261_v17 = vld [vmem:[%s3007_s4 + $0x84] ss:$28 sps:$4 sm:$0xff]  }
 0x4cf   :  { %v588_v22 = vmax.f32 %v583_v16, 0.0  ;;  %v2081_v23 = vpop.f32.mrb[11].mxu0  ;;  %v2258_v16 = vld [vmem:[%s3007_s4 + $0x50] ss:$28 sps:$4 sm:$0xff]   ;;  %v2262_v18 = vld [vmem:[%s3007_s4 + $0x248] ss:$28 sps:$4 sm:$0xff]  }
 0x4d0   :  { %v2263_v23 = vld [vmem:[%s3007_s4 + $0x88] ss:$28 sps:$4 sm:$0xff]  }
 0x4d1   :  { %v589_v25 = vpack.c.bf16 %v588_v22, %v588_v22  ;;  %v2259_v22 = vld [vmem:[%s3007_s4 + $0x80] ss:$28 sps:$4 sm:$0xff]  }
 0x4d3   :  { %732 = vmatmul.mubr.bf16.vlgmr.msra.gmra.mrb[8].mxu1 %v589_v25  ;;  %v2267_v25 = vld [vmem:[%s3007_s4 + $0x280] ss:$28 sps:$4 sm:$0xff]  }
 0x4d4   :  { %1530 = vmatpush1.bf16.msra.mxu1 %v2156_v24  ;;  %v2266_v24 = vld [vmem:[%s3007_s4 + $0xbc] ss:$28 sps:$4 sm:$0xff]  }
 0x4d5   :  { %1531 = vmatprep.subr.bf16.mxu1 %v2164_v1  ;;  %v2264_v1 = vld [vmem:[%s3007_s4 + $0xb8] ss:$28 sps:$4 sm:$0xff]  }
 0x4d8   :  { %1532 = vmatpush1.bf16.msra.mxu1 %v2162_v26  ;;  %v2268_v26 = vld [vmem:[%s3007_s4 + $0xc0] ss:$28 sps:$4 sm:$0xff]  }
 0x4d9   :  { %1533 = vmatprep.subr.bf16.mxu1 %v2170_v2  ;;  %v2271_v2 = vld [vmem:[%s3007_s4 + $0xf4] ss:$28 sps:$4 sm:$0xff]  }
 0x4dc   :  { %1534 = vmatpush1.bf16.msra.mxu1 %v2168_v27  ;;  %v2272_v27 = vld [vmem:[%s3007_s4 + $0x2b8] ss:$28 sps:$4 sm:$0xff]  }
 0x4dd   :  { %1535 = vmatprep.subr.bf16.mxu1 %v2176_v28  ;;  %v2269_v28 = vld [vmem:[%s3007_s4 + $0xf0] ss:$28 sps:$4 sm:$0xff]  }
 0x4e0   :  { %1536 = vmatpush1.bf16.msra.mxu1 %v2174_v29  ;;  %v2273_v29 = vld [vmem:[%s3007_s4 + $0xf8] ss:$28 sps:$4 sm:$0xff]  }
 0x4e1   :  { %1537 = vmatprep.subr.bf16.mxu1 %v2182_v30  ;;  %v2276_v30 = vld [vmem:[%s3007_s4 + $0x12c] ss:$28 sps:$4 sm:$0xff]  }
 0x4e4   :  { %1538 = vmatpush1.bf16.msra.mxu1 %v2180_v31  ;;  %v2277_v31 = vld [vmem:[%s3007_s4 + $0x2f0] ss:$28 sps:$4 sm:$0xff]  }
 0x4e5   :  { %1539 = vmatprep.subr.bf16.mxu1 %v2188_v32  ;;  %v2274_v32 = vld [vmem:[%s3007_s4 + $0x128] ss:$28 sps:$4 sm:$0xff]  }
 0x4e8   :  { %1540 = vmatpush1.bf16.msra.mxu1 %v2186_v33  ;;  %v2278_v33 = vld [vmem:[%s3007_s4 + $0x130] ss:$28 sps:$4 sm:$0xff]  }
 0x4e9   :  { %1541 = vmatprep.subr.bf16.mxu1 %v2194_v34  ;;  %v2281_v34 = vld [vmem:[%s3007_s4 + $0x164] ss:$28 sps:$4 sm:$0xff]  }
 0x4ec   :  { %1542 = vmatpush1.bf16.msra.mxu1 %v2192_v35  ;;  %v2282_v35 = vld [vmem:[%s3007_s4 + $0x328] ss:$28 sps:$4 sm:$0xff]  }
 0x4ed   :  { %1543 = vmatprep.subr.bf16.mxu1 %v2200_v36  ;;  %v2279_v36 = vld [vmem:[%s3007_s4 + $0x160] ss:$28 sps:$4 sm:$0xff]  }
 0x4f0   :  { %1544 = vmatpush1.bf16.msra.mxu1 %v2198_v37  ;;  %v2283_v37 = vld [vmem:[%s3007_s4 + $0x168] ss:$28 sps:$4 sm:$0xff]  }
 0x4f1   :  { %1545 = vmatprep.subr.bf16.mxu1 %v2206_v38  ;;  %v2286_v38 = vld [vmem:[%s3007_s4 + $0x19c] ss:$28 sps:$4 sm:$0xff]  }
 0x4f4   :  { %1546 = vmatpush1.bf16.msra.mxu1 %v2204_v39  ;;  %v2287_v39 = vld [vmem:[%s3007_s4 + $0x360] ss:$28 sps:$4 sm:$0xff]  }
 0x4f5   :  { %1547 = vmatprep.subr.bf16.mxu1 %v2212_v40  ;;  %v2284_v40 = vld [vmem:[%s3007_s4 + $0x198] ss:$28 sps:$4 sm:$0xff]  }
 0x4f8   :  { %1548 = vmatpush1.bf16.msra.mxu1 %v2210_v41  ;;  %v2288_v41 = vld [vmem:[%s3007_s4 + $0x1a0] ss:$28 sps:$4 sm:$0xff]  }
 0x4f9   :  { %1549 = vmatprep.subr.bf16.mxu1 %v2218_v42  ;;  %v2291_v42 = vld [vmem:[%s3007_s4 + $0x1d4] ss:$28 sps:$4 sm:$0xff]  }
 0x4fc   :  { %1550 = vmatpush1.bf16.msra.mxu1 %v2216_v43  ;;  %v2289_v43 = vld [vmem:[%s3007_s4 + $0x1d0] ss:$28 sps:$4 sm:$0xff]  }
 0x4fd   :  { %1551 = vmatprep.subr.bf16.mxu1 %v2224_v44  ;;  %v2294_v44 = vld [vmem:[%s3007_s4 + $0x20c] ss:$28 sps:$4 sm:$0xff]  }
 0x500   :  { %1552 = vmatpush1.bf16.msra.mxu1 %v2222_v45  ;;  %v2292_v45 = vld [vmem:[%s3007_s4 + $0x208] ss:$28 sps:$4 sm:$0xff]  }
 0x501   :  { %1553 = vmatprep.subr.bf16.mxu1 %v2230_v46  ;;  %v2297_v46 = vld [vmem:[%s3007_s4 + $0x244] ss:$28 sps:$4 sm:$0xff]  }
 0x504   :  { %1554 = vmatpush1.bf16.msra.mxu1 %v2228_v47  ;;  %v2295_v47 = vld [vmem:[%s3007_s4 + $0x240] ss:$28 sps:$4 sm:$0xff]  }
 0x505   :  { %1555 = vmatprep.subr.bf16.mxu1 %v2236_v48  ;;  %v2300_v48 = vld [vmem:[%s3007_s4 + $0x27c] ss:$28 sps:$4 sm:$0xff]  }
 0x508   :  { %1556 = vmatpush1.bf16.msra.mxu1 %v2234_v49  ;;  %v2298_v49 = vld [vmem:[%s3007_s4 + $0x278] ss:$28 sps:$4 sm:$0xff]  }
 0x509   :  { %1557 = vmatprep.subr.bf16.mxu1 %v2242_v51  ;;  %v2301_v51 = vld [vmem:[%s3007_s4 + $0x2b0] ss:$28 sps:$4 sm:$0xff]  }
 0x50c   :  { %1558 = vmatpush1.bf16.msra.mxu1 %v2240_v53  ;;  %v2304_v53 = vld [vmem:[%s3007_s4 + $0x2e8] ss:$28 sps:$4 sm:$0xff]  }
 0x50d   :  { %1559 = vmatprep.subr.bf16.mxu1 %v2248_v55  ;;  %v2307_v55 = vld [vmem:[%s3007_s4 + $0x320] ss:$28 sps:$4 sm:$0xff]  }
 0x510   :  { %1560 = vmatpush1.bf16.msra.mxu1 %v2246_v57  ;;  %v2310_v57 = vld [vmem:[%s3007_s4 + $0x358] ss:$28 sps:$4 sm:$0xff]   ;;  %s2341_s4 = smov [#allocation2]  }
 0x511   :  { %1960 = vmatprep.subr.bf16.mxu1 %v2252_v59  ;;  %v1802_v59 = vld [vmem:[%s3008_s5 + $0x7] ss:$8 sm:$0x70]  ;;  %s1672_s5 = sshll.u32 %s2341_s4, 4  ;;  %s1673_s5 = int_to_ptr.vmem [resolvable:$true] %s1672_s5 }
 0x512   :  { %v875_v60 = vor.u32 %v1802_v59, %v1801_v58  ;;  %s2313_s3 = scalar_lea.vmem %s1673_s5, 896  ;;  %p2318_p1 = scmp.lt.s32.totalorder %s1673_s5, %s1673_s5 }
 0x513   :  { %p2314_p0 = scmp.ne.s32.totalorder %s1673_s5, %s2313_s3  ;;  %p2319_p2 = scmp.lt.s32.totalorder %s2313_s3, %s2313_s3 }
 0x515   :  { %p2320_p3 = por %p2319_p2, %p2318_p1 }
 0x517   :  { %p2321_p4 = pnand %p2320_p3, %p2314_p0 }
 0x5a6   :  { %v733_v63 = vpop.f32.mrb[8].mxu1 }
 0x5a7   :  { %v734_v0 = vadd.f32 %v733_v63, %v612_v61  ;;  %v735_v3 = vpop.f32.mrb[9].mxu1  ;;  %v887_v61 = vsub.s32 2, %v2443_v19  ;;  %v880_v63 = vrot.slane %v875_v60, %v2446_v20 }
 0x5a8   :  { %v736_v4 = vadd.f32 %v735_v3, %v616_v62  ;;  %v737_v5 = vpop.f32.mrb[10].mxu1  ;;  %v891_v62 = vsub.s32 3, %v2443_v19  ;;  %v884_v3 = vrot.slane %v875_v60, %v2449_v21  ;;  %v903_v21 = vsub.s32 6, %v2443_v19 }
 0x5a9   :  { %v740_v6 = vmax.f32 %v734_v0, 0.0  ;;  %v738_v7 = vpop.f32.mrb[11].mxu1  ;;  %v888_v0 = vrot.slane %v875_v60, %v887_v61 }
 0x5aa   :  { %v741_v8 = vmax.f32 %v736_v4, 0.0  ;;  %v892_v4 = vrot.slane %v875_v60, %v891_v62 }
 0x5ab   :  { %v2840_v12 = vpack.c.bf16 %v740_v6, %v740_v6 }
 0x5ac   :  { %v743_v9 = vpack.c.bf16 %v741_v8, %v741_v8 }
 0x5ae   :  { %1520 = vmatprep.mubr.bf16.mxu0 %v743_v9  ;;  %1561 = vmatprep.mubr.bf16.mxu1 %v743_v9 }
 0x5af   :  { %1521 = vmatmul.mubr.bf16.vlgmr.msra.gmra.mrb[12].mxu0 %v2840_v12  ;;  %1562 = vmatmul.mubr.bf16.vlgmr.msra.gmra.mrb[12].mxu1 %v2840_v12 }
 0x5b0   :  { %1571 = vmatpush1.bf16.msra.mxu0 %v2249_v10  ;;  %1961 = vmatpush3.bf16.msra.mxu1 %v2253_v11 }
 0x5b1   :  { %1602 = vmatprep.mubr.bf16.mxu0 %v743_v9  ;;  %1643 = vmatprep.mubr.bf16.mxu1 %v743_v9 }
 0x5b2   :  { %1572 = vmatprep.subr.bf16.mxu0 %v2256_v13  ;;  %1962 = vmatprep.subr.bf16.mxu1 %v2257_v14 }
 0x5b4   :  { %1573 = vmatpush1.bf16.msra.mxu0 %v2254_v15  ;;  %1963 = vmatpush3.bf16.msra.mxu1 %v2258_v16 }
 0x5b5   :  { %1574 = vmatprep.subr.bf16.mxu0 %v2261_v17  ;;  %1964 = vmatprep.subr.bf16.mxu1 %v2262_v18 }
 0x5b8   :  { %1575 = vmatpush1.bf16.msra.mxu0 %v2259_v22  ;;  %1965 = vmatpush3.bf16.msra.mxu1 %v2263_v23 }
 0x5b9   :  { %1576 = vmatprep.subr.bf16.mxu0 %v2266_v24  ;;  %1966 = vmatprep.subr.bf16.mxu1 %v2267_v25  ;;  %v904_v24 = vrot.slane %v875_v60, %v903_v21 }
 0x5bc   :  { %1577 = vmatpush1.bf16.msra.mxu0 %v2264_v1  ;;  %1967 = vmatpush3.bf16.msra.mxu1 %v2268_v26 }
 0x5bd   :  { %1578 = vmatprep.subr.bf16.mxu0 %v2271_v2  ;;  %1968 = vmatprep.subr.bf16.mxu1 %v2272_v27 }
 0x5c0   :  { %1579 = vmatpush1.bf16.msra.mxu0 %v2269_v28  ;;  %1969 = vmatpush3.bf16.msra.mxu1 %v2273_v29  ;;  %v895_v29 = vsub.s32 4, %v2443_v19 }
 0x5c1   :  { %1580 = vmatprep.subr.bf16.mxu0 %v2276_v30  ;;  %1970 = vmatprep.subr.bf16.mxu1 %v2277_v31  ;;  %v899_v30 = vsub.s32 5, %v2443_v19 }
 0x5c2   :  { %v896_v31 = vrot.slane %v875_v60, %v895_v29 }
 0x5c4   :  { %1581 = vmatpush1.bf16.msra.mxu0 %v2274_v32  ;;  %1971 = vmatpush3.bf16.msra.mxu1 %v2278_v33  ;;  %v900_v32 = vrot.slane %v875_v60, %v899_v30 }
 0x5c5   :  { %1582 = vmatprep.subr.bf16.mxu0 %v2281_v34  ;;  %1972 = vmatprep.subr.bf16.mxu1 %v2282_v35 }
 0x5c8   :  { %1583 = vmatpush1.bf16.msra.mxu0 %v2279_v36  ;;  %1973 = vmatpush3.bf16.msra.mxu1 %v2283_v37 }
 0x5c9   :  { %1584 = vmatprep.subr.bf16.mxu0 %v2286_v38  ;;  %1974 = vmatprep.subr.bf16.mxu1 %v2287_v39 }
 0x5cc   :  { %1585 = vmatpush1.bf16.msra.mxu0 %v2284_v40  ;;  %1975 = vmatpush3.bf16.msra.mxu1 %v2288_v41 }
 0x5cd   :  { %1586 = vmatprep.subr.bf16.mxu0 %v2291_v42 }
 0x5cf   :  { %1644 = vmatmul.mubr.bf16.vlgmr.msra.gmra.mrb[16].mxu1 %v2840_v12 }
 0x5d0   :  { %1587 = vmatpush1.bf16.msra.mxu0 %v2289_v43 }
 0x5d1   :  { %1588 = vmatprep.subr.bf16.mxu0 %v2294_v44 }
 0x5d4   :  { %1589 = vmatpush1.bf16.msra.mxu0 %v2292_v45 }
 0x5d5   :  { %1590 = vmatprep.subr.bf16.mxu0 %v2297_v46 }
 0x5d8   :  { %1591 = vmatpush1.bf16.msra.mxu0 %v2295_v47 }
 0x5d9   :  { %1592 = vmatprep.subr.bf16.mxu0 %v2300_v48 }
 0x5dc   :  { %1593 = vmatpush1.bf16.msra.mxu0 %v2298_v49 }
 0x5dd   :  { %1594 = vmatprep.subr.bf16.mxu0 %v2303_v50 }
 0x5e0   :  { %1595 = vmatpush1.bf16.msra.mxu0 %v2301_v51 }
 0x5e1   :  { %1596 = vmatprep.subr.bf16.mxu0 %v2306_v52 }
 0x5e4   :  { %1597 = vmatpush1.bf16.msra.mxu0 %v2304_v53 }
 0x5e5   :  { %1598 = vmatprep.subr.bf16.mxu0 %v2309_v54 }
 0x5e8   :  { %1599 = vmatpush1.bf16.msra.mxu0 %v2307_v55 }
 0x5e9   :  { %1600 = vmatprep.subr.bf16.mxu0 %v2312_v56 }
 0x5ec   :  { %1601 = vmatpush1.bf16.msra.mxu0 %v2310_v57 }
 0x5ef   :  { %1603 = vmatmul.mubr.bf16.vlgmr.msra.gmra.mrb[16].mxu0 %v2840_v12 }
 0x682   :  { %v1522_v5 = vpop.f32.mrb[12].mxu0  ;;  %v1563_v6 = vpop.f32.mrb[12].mxu1 }
 0x683   :  { %v1523_v7 = vadd.f32 %v1522_v5, %v880_v63  ;;  %v1564_v8 = vadd.f32 %v1563_v6, %v888_v0  ;;  %v1524_v9 = vpop.f32.mrb[13].mxu0  ;;  %v1565_v10 = vpop.f32.mrb[13].mxu1 }
 0x684   :  { %v1525_v11 = vadd.f32 %v1524_v9, %v884_v3  ;;  %v1566_v12 = vadd.f32 %v1565_v10, %v892_v4  ;;  %v1526_v13 = vpop.f32.mrb[14].mxu0  ;;  %v1567_v14 = vpop.f32.mrb[14].mxu1 }
 0x685   :  { %v1651_v15 = vmax.f32 %v1523_v7, 0.0  ;;  %v1653_v16 = vmax.f32 %v1564_v8, 0.0  ;;  %v1527_v17 = vpop.f32.mrb[15].mxu0  ;;  %v1568_v18 = vpop.f32.mrb[15].mxu1 }
 0x686   :  { %v1652_v22 = vmax.f32 %v1525_v11, 0.0  ;;  %v1654_v20 = vmax.f32 %v1566_v12, 0.0 }
 0x687   :  { %1658 = vst [vmem:[#allocation2] sm:$0xff] %v1651_v15  ;;  %1660 = vst [vmem:[#allocation2 + $0x10] sm:$0xff] %v1653_v16 }
 0x688   :  { %1659 = vst [vmem:[#allocation2 + $0x8] sm:$0xff] %v1652_v22  ;;  %1661 = vst [vmem:[#allocation2 + $0x18] sm:$0xff] %v1654_v20 }
 0x6a2   :  { %v1976_v23 = vpop.f32.mrb[16].mxu1 }
 0x6a3   :  { %v1977_v25 = vpop.f32.mrb[17].mxu1 }
 0x6a4   :  { %v1978_v1 = vadd.f32 %v1977_v25, %v1976_v23  ;;  %v1979_v26 = vpop.f32.mrb[18].mxu1 }
 0x6a5   :  { %v1980_v2 = vpop.f32.mrb[19].mxu1 }
 0x6a6   :  { %v1646_v27 = vadd.f32 %v1978_v1, %v904_v24 }
 0x6a8   :  { %v1657_v28 = vmax.f32 %v1646_v27, 0.0 }
 0x6aa   :  { %1665 = vst.msk [vmem:[#allocation2 + $0x30] sm:$0xff] %vm1664_vm1, %v1657_v28 }
 0x6c2   :  { %v1604_v33 = vpop.f32.mrb[16].mxu0 }
 0x6c3   :  { %v1605_v34 = vadd.f32 %v1604_v33, %v896_v31  ;;  %v1606_v35 = vpop.f32.mrb[17].mxu0 }
 0x6c4   :  { %v1607_v36 = vadd.f32 %v1606_v35, %v900_v32  ;;  %v1608_v37 = vpop.f32.mrb[18].mxu0 }
 0x6c5   :  { %v1655_v38 = vmax.f32 %v1605_v34, 0.0  ;;  %v1609_v39 = vpop.f32.mrb[19].mxu0 }
 0x6c6   :  { %v1656_v40 = vmax.f32 %v1607_v36, 0.0 }
 0x6c7   :  { %1662 = vst [vmem:[#allocation2 + $0x20] sm:$0xff] %v1655_v38 }
 0x6c8   :  { %1663 = vst [vmem:[#allocation2 + $0x28] sm:$0xff] %v1656_v40 }
 0x6c9   :  { %2324 = shalt.err (!%p2321_p4)
}
 0x6ca   :  { %s2325_s26 = scalar_lea.hbm %s3009_s6, 896 }
 0x6cb   :  { %p2326_p5 = scmp.ne.s32.totalorder %s3009_s6, %s2325_s26  ;;  %p2329_p6 = scmp.lt.u32.totalorder %s2325_s26, %s3009_s6 }
 0x6cd   :  { %p2331_p7 = pnand %p2329_p6, %p2326_p5 }
 0x6cf   :  { %2334 = shalt.err (!%p2331_p7)
}
 0x6d0   :  { %1675 = dma.vmem_to_hbm [thread:$0]  %s1673_s5, 896, %s3009_s6, [#allocation3]  }
 0x6d1   :  { %2335 = dma.done.wait [#allocation3], 896  }
 0x6d2   :  { %2336 = vsyncadd [#allocation3], 4294966400 }
 0x6d3   :  { %1679 = vsyncpa [#allocation3], 1 }

</bundles_post_ra>
